<compile_context>
chip_gen: v5e
topology: v5e:2x2
jax: 0.10.0
libtpu: 0.0.40
codegen_flags: <defaults>
</compile_context>

<pallas_src>
import jax
import jax.numpy as jnp
from jax import lax
from jax.experimental import pallas as pl
from jax.experimental.pallas import tpu as pltpu


def _abs_prefix_sum_kernel(p_ref, o_ref):
    """o[0, i] = sum_{j<=i} |p[0, j]|  (inclusive prefix sum of |params|)."""
    x = jnp.abs(p_ref[...].astype(jnp.float32))            # (1, S_pad)
    n = x.shape[1]
    lane = lax.broadcasted_iota(jnp.int32, x.shape, 1)      # lane index 0..n-1
    shift = 1
    while shift < n:                                        # log2(n) unrolled steps
        # rolled[0, i] = x[0, i - shift]  (circular); wrapped lanes are masked off
        rolled = pltpu.roll(x, shift=shift, axis=1)
        x = x + jnp.where(lane >= shift, rolled, jnp.zeros_like(x))
        shift *= 2
    o_ref[...] = x                                          # lane-dense store


def positive_mono_increase_forward(params):
    """params: (size, 1) float32 -> (size, 1) float32 = flip(cumsum(|params|))."""
    size = params.shape[0]
    size_pad = ((size + 127) // 128) * 128                  # lane-dense padding
    p_row = jnp.zeros((1, size_pad), jnp.float32)
    p_row = p_row.at[0, :size].set(params.reshape(size).astype(jnp.float32))

    out_row = pl.pallas_call(
        _abs_prefix_sum_kernel,
        out_shape=jax.ShapeDtypeStruct((1, size_pad), jnp.float32),
        grid=(1,),
        in_specs=[pl.BlockSpec((1, size_pad), lambda i: (0, 0))],
        out_specs=pl.BlockSpec((1, size_pad), lambda i: (0, 0)),
        compiler_params=pltpu.CompilerParams(
            dimension_semantics=("arbitrary",)),
    )(p_row)

    # flip(cumsum) == reversed prefix sum; index reversal of a tiny slab is
    # layout plumbing done in the wrapper (lax.rev has no in-kernel need here).
    return jnp.flip(out_row[0, :size], axis=0).reshape(size, 1)


def init_positive_mono_increase_params(size, val_min=1e-06):
    """Deterministic parameter init matching the module's shape: (size, 1)."""
    # Module init would be abs(val_min * ones((size, 1))); we perturb it
    # deterministically so the flipped cumsum is non-trivial to check.
    key = jax.random.PRNGKey(0)
    noise = jax.random.normal(key, (size, 1), dtype=jnp.float32)
    params = jnp.abs(val_min * jnp.ones((size, 1), jnp.float32)) + noise
    return params.astype(jnp.float32)


if __name__ == "__main__":
    size = 32
    params = init_positive_mono_increase_params(size)

    out = positive_mono_increase_forward(params)
    out = jax.block_until_ready(out)

    # pure-JAX reference of the PyTorch forward
    ref = jnp.flip(jnp.cumsum(jnp.abs(params), axis=0), axis=0)

    assert out.shape == (size, 1), out.shape
    assert out.dtype == jnp.float32, out.dtype
    assert jnp.allclose(out, ref, rtol=1e-5, atol=1e-5), (out, ref)

    print("KERNEL_OK")
</pallas_src>

<mosaic_0001>
module attributes {stable_mosaic.version = 11 : i64} {
  func.func @_abs_prefix_sum_kernel(%arg0: i32, %arg1: memref<1x128xf32, #tpu.memory_space<vmem>>, %arg2: memref<1x128xf32, #tpu.memory_space<vmem>>) attributes {dimension_semantics = [#tpu.dimension_semantics<arbitrary>], iteration_bounds = array<i64: 1>, scalar_prefetch = 0 : i64, scratch_operands = 0 : i64, tpu.core_type = #tpu.core_type<tc>, window_params = [{pipeline_mode = #tpu.pipeline_mode<synchronous>, transform_indices = @transform_0, window_bounds = array<i64: 1, 128>}, {pipeline_mode = #tpu.pipeline_mode<synchronous>, transform_indices = @transform_1, window_bounds = array<i64: 1, 128>}]} {
    %c0 = arith.constant 0 : index
    %c0_0 = arith.constant 0 : index
    %0 = vector.load %arg1[%c0, %c0_0] : memref<1x128xf32, #tpu.memory_space<vmem>>, vector<1x128xf32>
    %1 = math.absf %0 : vector<1x128xf32>
    %2 = tpu.iota {dimensions = array<i32: 1>} : vector<1x128xi32>
    %c1_i32 = arith.constant 1 : i32
    %3 = tpu.dynamic_rotate %1 by %c1_i32 dim 1 : vector<1x128xf32>, i32 -> vector<1x128xf32>
    %c1_i32_1 = arith.constant 1 : i32
    %4 = vector.broadcast %c1_i32_1 : i32 to vector<1x128xi32>
    %5 = arith.cmpi sge, %2, %4 : vector<1x128xi32>
    %cst = arith.constant 0.000000e+00 : f32
    %6 = vector.broadcast %cst : f32 to vector<1x128xf32>
    %7 = arith.select %5, %3, %6 : vector<1x128xi1>, vector<1x128xf32>
    %8 = arith.addf %1, %7 : vector<1x128xf32>
    %c2_i32 = arith.constant 2 : i32
    %9 = tpu.dynamic_rotate %8 by %c2_i32 dim 1 : vector<1x128xf32>, i32 -> vector<1x128xf32>
    %c2_i32_2 = arith.constant 2 : i32
    %10 = vector.broadcast %c2_i32_2 : i32 to vector<1x128xi32>
    %11 = arith.cmpi sge, %2, %10 : vector<1x128xi32>
    %cst_3 = arith.constant 0.000000e+00 : f32
    %12 = vector.broadcast %cst_3 : f32 to vector<1x128xf32>
    %13 = arith.select %11, %9, %12 : vector<1x128xi1>, vector<1x128xf32>
    %14 = arith.addf %8, %13 : vector<1x128xf32>
    %c4_i32 = arith.constant 4 : i32
    %15 = tpu.dynamic_rotate %14 by %c4_i32 dim 1 : vector<1x128xf32>, i32 -> vector<1x128xf32>
    %c4_i32_4 = arith.constant 4 : i32
    %16 = vector.broadcast %c4_i32_4 : i32 to vector<1x128xi32>
    %17 = arith.cmpi sge, %2, %16 : vector<1x128xi32>
    %cst_5 = arith.constant 0.000000e+00 : f32
    %18 = vector.broadcast %cst_5 : f32 to vector<1x128xf32>
    %19 = arith.select %17, %15, %18 : vector<1x128xi1>, vector<1x128xf32>
    %20 = arith.addf %14, %19 : vector<1x128xf32>
    %c8_i32 = arith.constant 8 : i32
    %21 = tpu.dynamic_rotate %20 by %c8_i32 dim 1 : vector<1x128xf32>, i32 -> vector<1x128xf32>
    %c8_i32_6 = arith.constant 8 : i32
    %22 = vector.broadcast %c8_i32_6 : i32 to vector<1x128xi32>
    %23 = arith.cmpi sge, %2, %22 : vector<1x128xi32>
    %cst_7 = arith.constant 0.000000e+00 : f32
    %24 = vector.broadcast %cst_7 : f32 to vector<1x128xf32>
    %25 = arith.select %23, %21, %24 : vector<1x128xi1>, vector<1x128xf32>
    %26 = arith.addf %20, %25 : vector<1x128xf32>
    %c16_i32 = arith.constant 16 : i32
    %27 = tpu.dynamic_rotate %26 by %c16_i32 dim 1 : vector<1x128xf32>, i32 -> vector<1x128xf32>
    %c16_i32_8 = arith.constant 16 : i32
    %28 = vector.broadcast %c16_i32_8 : i32 to vector<1x128xi32>
    %29 = arith.cmpi sge, %2, %28 : vector<1x128xi32>
    %cst_9 = arith.constant 0.000000e+00 : f32
    %30 = vector.broadcast %cst_9 : f32 to vector<1x128xf32>
    %31 = arith.select %29, %27, %30 : vector<1x128xi1>, vector<1x128xf32>
    %32 = arith.addf %26, %31 : vector<1x128xf32>
    %c32_i32 = arith.constant 32 : i32
    %33 = tpu.dynamic_rotate %32 by %c32_i32 dim 1 : vector<1x128xf32>, i32 -> vector<1x128xf32>
    %c32_i32_10 = arith.constant 32 : i32
    %34 = vector.broadcast %c32_i32_10 : i32 to vector<1x128xi32>
    %35 = arith.cmpi sge, %2, %34 : vector<1x128xi32>
    %cst_11 = arith.constant 0.000000e+00 : f32
    %36 = vector.broadcast %cst_11 : f32 to vector<1x128xf32>
    %37 = arith.select %35, %33, %36 : vector<1x128xi1>, vector<1x128xf32>
    %38 = arith.addf %32, %37 : vector<1x128xf32>
    %c64_i32 = arith.constant 64 : i32
    %39 = tpu.dynamic_rotate %38 by %c64_i32 dim 1 : vector<1x128xf32>, i32 -> vector<1x128xf32>
    %c64_i32_12 = arith.constant 64 : i32
    %40 = vector.broadcast %c64_i32_12 : i32 to vector<1x128xi32>
    %41 = arith.cmpi sge, %2, %40 : vector<1x128xi32>
    %cst_13 = arith.constant 0.000000e+00 : f32
    %42 = vector.broadcast %cst_13 : f32 to vector<1x128xf32>
    %43 = arith.select %41, %39, %42 : vector<1x128xi1>, vector<1x128xf32>
    %44 = arith.addf %38, %43 : vector<1x128xf32>
    %c0_14 = arith.constant 0 : index
    %c0_15 = arith.constant 0 : index
    %45 = vector.load %arg2[%c0_14, %c0_15] : memref<1x128xf32, #tpu.memory_space<vmem>>, vector<1x128xf32>
    tpu.vector_store %arg2[%c0_14, %c0_15], %44 {strides = array<i32>} : memref<1x128xf32, #tpu.memory_space<vmem>>, vector<1x128xf32>,
    return
  }
  func.func @transform_0(%arg0: i32) -> (i32, i32) {
    %c0_i32 = arith.constant 0 : i32
    %c0_i32_0 = arith.constant 0 : i32
    %c0_i32_1 = arith.constant 0 : i32
    return %c0_i32, %c0_i32_0 : i32, i32
  }
  func.func @transform_1(%arg0: i32) -> (i32, i32) {
    %c0_i32 = arith.constant 0 : i32
    %c0_i32_0 = arith.constant 0 : i32
    %c0_i32_1 = arith.constant 0 : i32
    return %c0_i32, %c0_i32_0 : i32, i32
  }
}

</mosaic_0001>

<bundles_post_ra>
// kernel: tpu_custom_call.1
= control target key start
LH: loop header
LB: loop body
LE: loop exit
PB: predicated region body
PF: predicated region fallthrough
CT: control target
= control target key end

     0   :  { %6 = vsyncpa [#allocation3], 0  ;;  %s166_s0 = inlined_call_operand.hbm [shape: f32[1,128], index: 0, kind: input, shape index: {}]   ;;  %s167_s1 = inlined_call_operand.hbm [shape: f32[1,128], index: 1, kind: output, shape index: {}]  }
   0x1   :  { %7 = vsyncpa [#allocation4], 0  ;;  %s13_s8 = sshll.u32 %s166_s0, 4  ;;  %s141_s9 = smov [#allocation2]   ;;  %s14_s8 = int_to_ptr.hbm [resolvable:$true] %s13_s8 }
   0x2   :  { %s15_s10 = sshll.u32 %s141_s9, 4  ;;  %s16_s10 = int_to_ptr.vmem [resolvable:$true] %s15_s10 }
   0x3   :  { %18 = dma.hbm_to_vmem [thread:$0]  %s14_s8, 16, %s16_s10, [#allocation3]  }
   0x4   :  { %137 = dma.done.wait [#allocation3], 16  }
   0x5   :  { %138 = vsyncadd [#allocation3], 4294967280  ;;  %v23_v0 = vld [vmem:[#allocation2] sm:$0x1]  ;;  %s142_s11 = smov 1   ;;  %v25_v2 = vlaneseq  ;;  %s143_s12 = smov 2  }
   0x6   :  { %v24_v1 = vand.u32 2147483647, %v23_v0  ;;  %s144_s0 = smov 4   ;;  %s145_s13 = smov 8  }
   0x7   :  { %v26_v3 = vand.u32 127, %v25_v2  ;;  %s146_s14 = smov 16   ;;  %s147_s15 = smov 32  }
   0x8   :  { %27 = vrot.lane.b32.xlu0 %v24_v1, %s142_s11  ;;  %s148_s16 = smov 64   ;;  %s149_s17 = smov [#allocation5]  }
   0x9   :  { %vm29_vm0 = vcmp.ge.s32.totalorder %v26_v3, 1  ;;  %vm34_vm1 = vcmp.ge.s32.totalorder %v26_v3, 2  ;;  %vm39_vm2 = vcmp.ge.s32.totalorder %v26_v3, 4  ;;  %vm44_vm3 = vcmp.ge.s32.totalorder %v26_v3, 8  ;;  %s68_s18 = sshll.u32 %s149_s17, 4  ;;  %s70_s21 = sshll.u32 %s167_s1, 4  ;;  %s69_s18 = int_to_ptr.vmem [resolvable:$true] %s68_s18  ;;  %s71_s21 = int_to_ptr.hbm [resolvable:$true] %s70_s21 }
   0xa   :  { %vm49_vm4 = vcmp.ge.s32.totalorder %v26_v3, 16  ;;  %vm54_vm5 = vcmp.ge.s32.totalorder %v26_v3, 32  ;;  %vm59_vm6 = vcmp.ge.s32.totalorder %v26_v3, 64 }
  0x7a   :  { %v28_v4 = vpop.permute.xlu0 %27 }
  0x7b   :  { %v30_v5 = vsel %vm29_vm0, %v28_v4, 0.0 }
  0x7c   :  { %v31_v6 = vadd.f32 %v30_v5, %v24_v1 }
  0x7e   :  { %32 = vrot.lane.b32.xlu0 %v31_v6, %s143_s12 }
  0xf0   :  { %v33_v7 = vpop.permute.xlu0 %32 }
  0xf1   :  { %v35_v8 = vsel %vm34_vm1, %v33_v7, 0.0 }
  0xf2   :  { %v36_v9 = vadd.f32 %v35_v8, %v31_v6 }
  0xf4   :  { %37 = vrot.lane.b32.xlu1 %v36_v9, %s144_s0 }
 0x166   :  { %v38_v10 = vpop.permute.xlu1 %37 }
 0x167   :  { %v40_v11 = vsel %vm39_vm2, %v38_v10, 0.0 }
 0x168   :  { %v41_v12 = vadd.f32 %v40_v11, %v36_v9 }
 0x16a   :  { %42 = vrot.lane.b32.xlu1 %v41_v12, %s145_s13 }
 0x1dc   :  { %v43_v13 = vpop.permute.xlu1 %42 }
 0x1dd   :  { %v45_v14 = vsel %vm44_vm3, %v43_v13, 0.0 }
 0x1de   :  { %v46_v15 = vadd.f32 %v45_v14, %v41_v12 }
 0x1e0   :  { %47 = vrot.lane.b32.xlu2 %v46_v15, %s146_s14 }
 0x23a   :  { %v48_v16 = vpop.permute.xlu2 %47 }
 0x23b   :  { %v50_v17 = vsel %vm49_vm4, %v48_v16, 0.0 }
 0x23c   :  { %v51_v18 = vadd.f32 %v50_v17, %v46_v15 }
 0x23e   :  { %52 = vrot.lane.b32.xlu2 %v51_v18, %s147_s15 }
 0x298   :  { %v53_v19 = vpop.permute.xlu2 %52 }
 0x299   :  { %v55_v20 = vsel %vm54_vm5, %v53_v19, 0.0 }
 0x29a   :  { %v56_v21 = vadd.f32 %v55_v20, %v51_v18 }
 0x29c   :  { %57 = vrot.lane.b32.xlu0 %v56_v21, %s148_s16 }
 0x30e   :  { %v58_v22 = vpop.permute.xlu0 %57 }
 0x30f   :  { %v60_v23 = vsel %vm59_vm6, %v58_v22, 0.0 }
 0x310   :  { %v61_v24 = vadd.f32 %v60_v23, %v56_v21 }
 0x312   :  { %62 = vst [vmem:[#allocation5] sm:$0x1] %v61_v24 }
 0x313   :  { %73 = dma.vmem_to_hbm [thread:$0]  %s69_s18, 16, %s71_s21, [#allocation4]  }
 0x314   :  { %139 = dma.done.wait [#allocation4], 16  }
 0x315   :  { %140 = vsyncadd [#allocation4], 4294967280 }
 0x316   :  { %78 = vsyncpa [#allocation3], 1 }
 0x317   :  { %79 = vsyncpa [#allocation4], 1 }

</bundles_post_ra>
